<compile_context>
chip_gen: v5e
topology: v5e:2x2
jax: 0.10.0
libtpu: 0.0.40
codegen_flags: <defaults>
</compile_context>

<pallas_src>
import jax
import jax.numpy as jnp
from jax.experimental import pallas as pl
from jax.experimental.pallas import tpu as pltpu

FC_DIM = 64
OUT_DIM = 10


def _ort_linear_kernel(x_ref, w_ref, o_ref):
    # One MXU matmul per row tile: (TB, 64*pack) @ (64*pack, 10*pack).
    o_ref[...] = jnp.dot(
        x_ref[...],
        w_ref[...],
        preferred_element_type=jnp.float32,
        precision=jax.lax.Precision.HIGHEST,
    ).astype(o_ref.dtype)


def _blockdiag_weight(weight, pack):
    """blkdiag(W, ..., W): (pack*64, pack*10)."""
    eye = jnp.eye(pack, dtype=weight.dtype)
    wb = eye[:, None, :, None] * weight[None, :, None, :]   # (p, 64, p, 10)
    return wb.reshape(pack * FC_DIM, pack * OUT_DIM)


def _tpu_generation():
    """Best-effort TPU generation detection (7, 6, 5, ... or 0 if unknown)."""
    try:
        kind = jax.devices()[0].device_kind.lower().replace(" ", "")
    except Exception:
        return 0
    for g in (7, 6, 5, 4):
        if ("v%d" % g) in kind or ("tpu%d" % g) in kind:
            return g
    return 0


def _default_config(gen):
    # pack / packed-row tile / scoped-VMEM limit per generation.
    if gen >= 7:
        # 64 MiB physical VMEM per TC; ~25 MiB double-buffered at tb=8192.
        return dict(pack=4, block_rows=8192, vmem_limit=40 << 20, two_step=True)
    if gen == 6:
        # 128 MiB physical; default scoped is 32 MiB so raise it.
        return dict(pack=4, block_rows=8192, vmem_limit=48 << 20, two_step=False)
    if gen == 5:
        # v5e: K=128 matches the 128-deep MXU; default scoped is only 16 MiB.
        return dict(pack=2, block_rows=8192, vmem_limit=40 << 20, two_step=False)
    # Unknown hardware: conservative defaults.
    return dict(pack=4, block_rows=4096, vmem_limit=32 << 20, two_step=False)


def mlp_out_ort(x, weight, *, block_rows=None, pack=None, vmem_limit_bytes=None):
    """Forward pass of MLP_OUT_ORT: y = x @ W  (W orthogonal, no bias)."""
    B, D = x.shape
    assert D == FC_DIM and weight.shape == (FC_DIM, OUT_DIM)

    cfg = _default_config(_tpu_generation())
    pack = cfg["pack"] if pack is None else pack
    block_rows = cfg["block_rows"] if block_rows is None else block_rows
    vmem_limit_bytes = cfg["vmem_limit"] if vmem_limit_bytes is None else vmem_limit_bytes

    w = weight.astype(x.dtype)

    # --- ragged handling: no whole-array pad; aligned prefix + tiny tail dot.
    rem = B % pack
    b_main = B - rem
    if b_main == 0:
        return jnp.dot(
            x, w, preferred_element_type=jnp.float32,
            precision=jax.lax.Precision.HIGHEST,
        ).astype(x.dtype)

    x_main = x if rem == 0 else x[:b_main]

    # --- lane repack: (b_main, 64) -> (rows, 64*pack), pure row-major view ---
    rows = b_main // pack
    k = FC_DIM * pack
    n = OUT_DIM * pack
    x_packed = x_main.reshape(rows, k)
    w_packed = _blockdiag_weight(w, pack)

    # --- batch tiling ---------------------------------------------------------
    sub = 16 if x.dtype == jnp.bfloat16 else 8       # sublane packing
    tb = min(block_rows, rows)
    if cfg["two_step"] and rows >= 2 * sub:
        # v7x: guarantee >=2 grid steps so both TensorCores get sharded work.
        tb = min(tb, max(sub, (rows // 2 // sub) * sub))
    if rows >= sub:
        tb = max(sub, (tb // sub) * sub)              # sublane-aligned tile
    grid = (pl.cdiv(rows, tb),)

    itemsize = jnp.dtype(x.dtype).itemsize
    cost = pl.CostEstimate(
        flops=2 * rows * k * n,                       # matmul actually executed
        transcendentals=0,
        bytes_accessed=(rows * k + rows * n + k * n) * itemsize,
    )

    out = pl.pallas_call(
        _ort_linear_kernel,
        out_shape=jax.ShapeDtypeStruct((rows, n), x.dtype),
        grid=grid,
        in_specs=[
            pl.BlockSpec((tb, k), lambda i: (i, 0)),     # row tile, pipelined
            pl.BlockSpec((k, n), lambda i: (0, 0)),      # weight stays resident
        ],
        out_specs=pl.BlockSpec((tb, n), lambda i: (i, 0)),
        compiler_params=pltpu.CompilerParams(
            dimension_semantics=("parallel",),
            vmem_limit_bytes=vmem_limit_bytes,
        ),
        cost_estimate=cost,
    )(x_packed, w_packed)

    # (rows, pack*10) row-major is bit-identical memory to (b_main, 10).
    y_main = out.reshape(b_main, OUT_DIM)

    if rem == 0:
        return y_main
    y_tail = jnp.dot(
        x[b_main:], w, preferred_element_type=jnp.float32,
        precision=jax.lax.Precision.HIGHEST,
    ).astype(x.dtype)
    return jnp.concatenate([y_main, y_tail], axis=0)


def init_orthogonal_weight(key, in_features=FC_DIM, out_features=OUT_DIM):
    """Deterministic orthogonal weight (columns orthonormal), mimicking
    geotorch.orthogonal on the (64, 10) parameter."""
    a = jax.random.normal(key, (in_features, out_features), dtype=jnp.float32)
    q, r = jnp.linalg.qr(a)                 # q: (64, 10), q^T q = I_10
    d = jnp.sign(jnp.diag(r))
    d = jnp.where(d == 0, 1.0, d)
    return q * d[None, :]
    # TODO(synk): geotorch's training-time orthogonality parametrization has no
    # Pallas equivalent; only the forward matmul with an orthogonal weight is
    # implemented here.


if __name__ == "__main__":
    key = jax.random.PRNGKey(0)
    k_w, k_x1, k_x2 = jax.random.split(key, 3)

    weight = init_orthogonal_weight(k_w)                        # (64, 10)

    # Small smoke test (single tile).
    x_small = jax.random.normal(k_x1, (8, FC_DIM), jnp.float32)
    y_small = jax.block_until_ready(mlp_out_ort(x_small, weight))
    assert y_small.shape == (8, OUT_DIM)
    assert jnp.allclose(y_small, x_small @ weight, atol=1e-5, rtol=1e-5)

    # Ragged batch (not a multiple of pack or tile) to exercise the
    # aligned-prefix + remainder path.
    x_ragged = jax.random.normal(k_x2, (50, FC_DIM), jnp.float32)
    y_ragged = jax.block_until_ready(mlp_out_ort(x_ragged, weight))
    assert y_ragged.shape == (50, OUT_DIM)
    assert jnp.allclose(y_ragged, x_ragged @ weight, atol=1e-5, rtol=1e-5)

    print("KERNEL_OK")
</pallas_src>

<mosaic_0001>
module attributes {stable_mosaic.version = 11 : i64} {
  func.func @_ort_linear_kernel(%arg0: i32, %arg1: memref<2x256xf32, #tpu.memory_space<vmem>>, %arg2: memref<256x40xf32, #tpu.memory_space<vmem>>, %arg3: memref<2x40xf32, #tpu.memory_space<vmem>>) attributes {dimension_semantics = [#tpu.dimension_semantics<parallel>], iteration_bounds = array<i64: 1>, scalar_prefetch = 0 : i64, scratch_operands = 0 : i64, tpu.core_type = #tpu.core_type<tc>, window_params = [{transform_indices = @transform_0, window_bounds = array<i64: 2, 256>}, {pipeline_mode = #tpu.pipeline_mode<synchronous>, transform_indices = @transform_1, window_bounds = array<i64: 256, 40>}, {transform_indices = @transform_2, window_bounds = array<i64: 2, 40>}]} {
    %c0 = arith.constant 0 : index
    %c0_0 = arith.constant 0 : index
    %0 = vector.load %arg1[%c0, %c0_0] : memref<2x256xf32, #tpu.memory_space<vmem>>, vector<2x256xf32>
    %c0_1 = arith.constant 0 : index
    %c0_2 = arith.constant 0 : index
    %1 = vector.load %arg2[%c0_1, %c0_2] : memref<256x40xf32, #tpu.memory_space<vmem>>, vector<256x40xf32>
    %cst = arith.constant dense<0.000000e+00> : vector<2x40xf32>
    %2 = tpu.matmul %0, %1, %cst {dimension_numbers = #tpu.dot_dimension_numbers<[1], [0], [0], [1], [0, 0, 1, 1], [], []>, precision = #tpu.contract_precision<fp32>} : vector<2x256xf32>, vector<256x40xf32>, vector<2x40xf32> -> vector<2x40xf32>
    %c0_3 = arith.constant 0 : index
    %c0_4 = arith.constant 0 : index
    %3 = vector.load %arg3[%c0_3, %c0_4] : memref<2x40xf32, #tpu.memory_space<vmem>>, vector<2x40xf32>
    tpu.vector_store %arg3[%c0_3, %c0_4], %2 {strides = array<i32>} : memref<2x40xf32, #tpu.memory_space<vmem>>, vector<2x40xf32>,
    return
  }
  func.func @transform_0(%arg0: i32) -> (i32, i32) {
    %c0_i32 = arith.constant 0 : i32
    %c0_i32_0 = arith.constant 0 : i32
    return %arg0, %c0_i32 : i32, i32
  }
  func.func @transform_1(%arg0: i32) -> (i32, i32) {
    %c0_i32 = arith.constant 0 : i32
    %c0_i32_0 = arith.constant 0 : i32
    %c0_i32_1 = arith.constant 0 : i32
    return %c0_i32, %c0_i32_0 : i32, i32
  }
  func.func @transform_2(%arg0: i32) -> (i32, i32) {
    %c0_i32 = arith.constant 0 : i32
    %c0_i32_0 = arith.constant 0 : i32
    return %arg0, %c0_i32 : i32, i32
  }
}

</mosaic_0001>

<bundles_post_ra>
// kernel: tpu_custom_call.1
= control target key start
LH: loop header
LB: loop body
LE: loop exit
PB: predicated region body
PF: predicated region fallthrough
CT: control target
= control target key end

     0   :  { %s1402_s0 = inlined_call_operand.vmem [shape: f32[2,256], index: 0, kind: input, shape index: {}]   ;;  %s1403_s1 = inlined_call_operand.vmem [shape: f32[256,40], index: 1, kind: input, shape index: {}]   ;;  %s1404_s2 = inlined_call_operand.hbm [shape: f32[2,40], index: 2, kind: output, shape index: {}]  }
   0x1   :  { %v28_v0 = vld [vmem:[%s1403_s1 + $0x78] sm:$0xff]  ;;  %v27_v1 = vld [vmem:[%s1403_s1 + $0x70] sm:$0xff]  ;;  %v26_v2 = vld [vmem:[%s1403_s1 + $0x68] sm:$0xff] }
   0x2   :  { %v803_v3 = vand.u32 4294901760, %v28_v0  ;;  %v805_v4 = vand.u32 4294901760, %v27_v1  ;;  %v807_v5 = vand.u32 4294901760, %v26_v2  ;;  %v25_v6 = vld [vmem:[%s1403_s1 + $0x60] sm:$0xff]  ;;  %v24_v7 = vld [vmem:[%s1403_s1 + $0x58] sm:$0xff]  ;;  %v23_v8 = vld [vmem:[%s1403_s1 + $0x50] sm:$0xff] }
   0x3   :  { %v818_v9 = vand.u32 4294901760, %v25_v6  ;;  %v820_v10 = vand.u32 4294901760, %v24_v7  ;;  %v822_v11 = vand.u32 4294901760, %v23_v8  ;;  %v22_v12 = vld [vmem:[%s1403_s1 + $0x48] sm:$0xff]  ;;  %v21_v13 = vld [vmem:[%s1403_s1 + $0x40] sm:$0xff]  ;;  %v20_v18 = vld [vmem:[%s1403_s1 + $0x38] sm:$0xff] }
   0x4   :  { %52 = vmatpush.msra.mxu0 %v803_v3  ;;  %v832_v14 = vsub.f32 %v28_v0, %v803_v3  ;;  %v835_v15 = vsub.f32 %v27_v1, %v805_v4  ;;  %248 = vmatpush.msra.mxu3 %v803_v3  ;;  %v839_v16 = vsub.f32 %v26_v2, %v807_v5  ;;  %v841_v17 = vand.u32 4294901760, %v22_v12  ;;  %v19_v26 = vld [vmem:[%s1403_s1 + $0x30] sm:$0xff]  ;;  %v18_v34 = vld [vmem:[%s1403_s1 + $0x28] sm:$0xff] }
   0x5   :  { %v847_v19 = vsub.f32 %v25_v6, %v818_v9  ;;  %v850_v20 = vsub.f32 %v24_v7, %v820_v10  ;;  %v853_v21 = vsub.f32 %v23_v8, %v822_v11  ;;  %v860_v25 = vand.u32 4294901760, %v21_v13 }
   0x6   :  { %54 = vmatpush.msra.mxu0 %v805_v4  ;;  %195 = vmatpush.msra.mxu2 %v832_v14  ;;  %v94_v22 = vand.u32 4294901760, %v832_v14  ;;  %v1420_v23 = vand.u32 4294901760, %v835_v15  ;;  %v1418_v24 = vand.u32 4294901760, %v839_v16  ;;  %v867_v28 = vand.u32 4294901760, %v20_v18 }
   0x7   :  { %250 = vmatpush.msra.mxu3 %v805_v4  ;;  %v1416_v27 = vand.u32 4294901760, %v847_v19  ;;  %v870_v29 = vsub.f32 %v22_v12, %v841_v17  ;;  %v1414_v33 = vand.u32 4294901760, %v850_v20 }
   0x8   :  { %56 = vmatpush.msra.mxu0 %v807_v5  ;;  %198 = vmatpush.msra.mxu2 %v835_v15  ;;  %v95_v30 = vsub.f32 %v832_v14, %v94_v22  ;;  %v101_v31 = vsub.f32 %v835_v15, %v1420_v23  ;;  %v107_v32 = vsub.f32 %v839_v16, %v1418_v24 }
   0x9   :  { %7 = vsyncpa [#allocation3], 0  ;;  %252 = vmatpush.msra.mxu3 %v807_v5  ;;  %v888_v35 = vand.u32 4294901760, %v19_v26  ;;  %v1413_v36 = vand.u32 4294901760, %v853_v21  ;;  %v113_v39 = vsub.f32 %v847_v19, %v1416_v27  ;;  %v897_v40 = vsub.f32 %v21_v13, %v860_v25  ;;  %v17_v42 = vld [vmem:[%s1403_s1 + $0x20] sm:$0xff]  ;;  %v16_v48 = vld [vmem:[%s1403_s1 + $0x18] sm:$0xff] }
   0xa   :  { %58 = vmatpush.msra.mxu0 %v818_v9  ;;  %v96_v37 = vand.u32 4294901760, %v95_v30  ;;  %201 = vmatpush.msra.mxu2 %v839_v16  ;;  %v102_v38 = vand.u32 4294901760, %v101_v31  ;;  %v900_v41 = vand.u32 4294901760, %v18_v34  ;;  %v108_v43 = vand.u32 4294901760, %v107_v32  ;;  %v15_v54 = vld [vmem:[%s1403_s1 + $0x10] sm:$0xff]  ;;  %v44_v60 = vld [vmem:[%s1403_s1 + $0xf8] sm:$0xff] }
   0xb   :  { %254 = vmatpush.msra.mxu3 %v818_v9  ;;  %v119_v44 = vsub.f32 %v850_v20, %v1414_v33  ;;  %v1411_v45 = vand.u32 4294901760, %v870_v29  ;;  %v911_v46 = vsub.f32 %v20_v18, %v867_v28  ;;  %v125_v47 = vsub.f32 %v853_v21, %v1413_v36  ;;  %v12_v55 = vld [vmem:[%s1402_s0] sm:$0xf]  ;;  %v14_v62 = vld [vmem:[%s1403_s1 + $0x8] sm:$0xff]  ;;  %v43_v7 = vld [vmem:[%s1403_s1 + $0xf0] sm:$0xff]  ;;  %s742_s20 = sshll.u32 %s1404_s2, 4  ;;  %s743_s20 = int_to_ptr.hbm [resolvable:$true] %s742_s20 }
   0xc   :  { %60 = vmatpush.msra.mxu0 %v820_v10  ;;  %97 = vmatpush.msra.mxu1 %v96_v37  ;;  %v114_v49 = vand.u32 4294901760, %v113_v39  ;;  %v922_v50 = vand.u32 4294901760, %v17_v42  ;;  %v1410_v51 = vand.u32 4294901760, %v897_v40  ;;  %v926_v52 = vsub.f32 %v19_v26, %v888_v35  ;;  %46 = vst [vmem:[#allocation1] ss:$4 sm:$0xff] %v12_v55  ;;  %v13_v6 = vld [vmem:[%s1403_s1] sm:$0xff] }
   0xd   :  { %204 = vmatpush.msra.mxu2 %v847_v19  ;;  %256 = vmatpush.msra.mxu3 %v820_v10  ;;  %v931_v53 = vsub.f32 %v18_v34, %v900_v41  ;;  %v120_v56 = vand.u32 4294901760, %v119_v44  ;;  %v131_v57 = vsub.f32 %v870_v29, %v1411_v45  ;;  %v943_v58 = vand.u32 4294901760, %v16_v48  ;;  %v42_v34 = vld [vmem:[%s1403_s1 + $0xe8] sm:$0xff]  ;;  %v37_v45 = vld [vmem:[%s1403_s1 + $0xc0] sm:$0xff] }
   0xe   :  { %62 = vmatpush.msra.mxu0 %v822_v11  ;;  %103 = vmatpush.msra.mxu1 %v102_v38  ;;  %v1409_v59 = vand.u32 4294901760, %v911_v46  ;;  %v126_v61 = vand.u32 4294901760, %v125_v47  ;;  %v137_v63 = vsub.f32 %v897_v40, %v1410_v51  ;;  %v958_v0 = vand.u32 4294901760, %v15_v54  ;;  %v41_v47 = vld [vmem:[%s1403_s1 + $0xe0] sm:$0xff] }
   0xf   :  { %207 = vmatpush.msra.mxu2 %v850_v20  ;;  %258 = vmatpush.msra.mxu3 %v822_v11  ;;  %v1407_v1 = vand.u32 4294901760, %v926_v52  ;;  %v962_v2 = vsub.f32 %v17_v42, %v922_v50  ;;  %v1406_v8 = vand.u32 4294901760, %v931_v53  ;;  %v973_v12 = vand.u32 4294901760, %v44_v60 }
  0x10   :  { %64 = vmatpush.msra.mxu0 %v841_v17  ;;  %109 = vmatpush.msra.mxu1 %v108_v43  ;;  %v132_v13 = vand.u32 4294901760, %v131_v57  ;;  %v143_v18 = vsub.f32 %v911_v46, %v1409_v59  ;;  %v979_v26 = vand.u32 4294901760, %v14_v62  ;;  %v982_v30 = vsub.f32 %v16_v48, %v943_v58 }
  0x11   :  { %210 = vmatpush.msra.mxu2 %v853_v21  ;;  %260 = vmatpush.msra.mxu3 %v841_v17  ;;  %v986_v31 = vand.u32 4294901760, %v13_v6  ;;  %v988_v32 = vand.u32 4294901760, %v43_v7  ;;  %v138_v37 = vand.u32 4294901760, %v137_v63  ;;  %v149_v38 = vsub.f32 %v926_v52, %v1407_v1 }
  0x12   :  { %66 = vmatpush.msra.mxu0 %v860_v25  ;;  %115 = vmatpush.msra.mxu1 %v114_v49  ;;  %v1405_v39 = vand.u32 4294901760, %v962_v2  ;;  %v999_v42 = vsub.f32 %v15_v54, %v958_v0  ;;  %v155_v43 = vsub.f32 %v931_v53, %v1406_v8  ;;  %v1007_v44 = vsub.f32 %v44_v60, %v973_v12  ;;  %v40_v60 = vld [vmem:[%s1403_s1 + $0xd8] sm:$0xff]  ;;  %v38_v8 = vld [vmem:[%s1403_s1 + $0xc8] sm:$0xff] }
  0x13   :  { %213 = vmatpush.msra.mxu2 %v870_v29  ;;  %262 = vmatpush.msra.mxu3 %v860_v25  ;;  %v144_v48 = vand.u32 4294901760, %v143_v18  ;;  %v1408_v49 = vand.u32 4294901760, %v982_v30  ;;  %v1015_v54 = vsub.f32 %v14_v62, %v979_v26  ;;  %v1017_v55 = vand.u32 4294901760, %v42_v34  ;;  %v39_v18 = vld [vmem:[%s1403_s1 + $0xd0] sm:$0xff] }
  0x14   :  { %68 = vmatpush.msra.mxu0 %v867_v28  ;;  %121 = vmatpush.msra.mxu1 %v120_v56  ;;  %v1022_v56 = vsub.f32 %v13_v6, %v986_v31  ;;  %v1025_v57 = vsub.f32 %v43_v7, %v988_v32  ;;  %v161_v62 = vsub.f32 %v962_v2, %v1405_v39  ;;  %v1412_v63 = vand.u32 4294901760, %v999_v42 }
  0x15   :  { %216 = vmatpush.msra.mxu2 %v897_v40  ;;  %264 = vmatpush.msra.mxu3 %v867_v28  ;;  %1429 = vst [vmem:[#allocation5_spill] sm:$0xff] %v1017_v55  ;;  %v156_v6 = vand.u32 4294901760, %v155_v43  ;;  %v1415_v7 = vand.u32 4294901760, %v1007_v44  ;;  %v1049_v39 = vsub.f32 %v42_v34, %v1017_v55  ;;  %v1051_v43 = vand.u32 4294901760, %v40_v60 }
  0x16   :  { %70 = vmatpush.msra.mxu0 %v888_v35  ;;  %127 = vmatpush.msra.mxu1 %v126_v61  ;;  %v150_v61 = vand.u32 4294901760, %v149_v38  ;;  %v1417_v38 = vand.u32 4294901760, %v1015_v54  ;;  %v1419_v1 = vand.u32 4294901760, %v1025_v57  ;;  %v173_v34 = vsub.f32 %v999_v42, %v1412_v63 }
  0x17   :  { %219 = vmatpush.msra.mxu2 %v911_v46  ;;  %266 = vmatpush.msra.mxu3 %v888_v35  ;;  %v1067_v51 = vand.u32 4294901760, %v39_v18  ;;  %v1422_v36 = vand.u32 4294901760, %v1049_v39  ;;  %v1085_v33 = vsub.f32 %v40_v60, %v1051_v43  ;;  %v1092_v27 = vand.u32 4294901760, %v37_v45 }
  0x18   :  { %72 = vmatpush.msra.mxu0 %v900_v41  ;;  %133 = vmatpush.msra.mxu1 %v132_v13  ;;  %v1035_v13 = vand.u32 4294901760, %v41_v47  ;;  %v179_v63 = vsub.f32 %v1015_v54, %v1417_v38  ;;  %vm733_vm0 = vcmask 320512  }
  0x19   :  { %222 = vmatpush.msra.mxu2 %v926_v52  ;;  %268 = vmatpush.msra.mxu3 %v900_v41  ;;  %v1103_v24 = vsub.f32 %v39_v18, %v1067_v51  ;;  %v448_v18 = vsub.f32 %v1049_v39, %v1422_v36  ;;  %v1424_v14 = vand.u32 4294901760, %v1085_v33 }
  0x1a   :  { %74 = vmatpush.msra.mxu0 %v922_v50  ;;  %139 = vmatpush.msra.mxu1 %v138_v37  ;;  %v167_v37 = vsub.f32 %v982_v30, %v1408_v49  ;;  %v162_v49 = vand.u32 4294901760, %v161_v62  ;;  %v1065_v59 = vsub.f32 %v41_v47, %v1035_v13  ;;  %v1077_v62 = vand.u32 4294901760, %v38_v8 }
  0x1b   :  { %225 = vmatpush.msra.mxu2 %v931_v53  ;;  %270 = vmatpush.msra.mxu3 %v922_v50 }
  0x1c   :  { %76 = vmatpush.msra.mxu0 %v943_v58  ;;  %145 = vmatpush.msra.mxu1 %v144_v48  ;;  %v1421_v48 = vand.u32 4294901760, %v1022_v56  ;;  %v168_v47 = vand.u32 4294901760, %v167_v37  ;;  %v174_v37 = vand.u32 4294901760, %v173_v34  ;;  %v1423_v38 = vand.u32 4294901760, %v1065_v59 }
  0x1d   :  { %228 = vmatpush.msra.mxu2 %v962_v2  ;;  %272 = vmatpush.msra.mxu3 %v943_v58  ;;  %v1109_v23 = vsub.f32 %v38_v8, %v1077_v62  ;;  %v180_v34 = vand.u32 4294901760, %v179_v63  ;;  %v34_v63 = vld [vmem:[%s1403_s1 + $0xa8] sm:$0xff] }
  0x1e   :  { %78 = vmatpush.msra.mxu0 %v958_v0  ;;  %151 = vmatpush.msra.mxu1 %v150_v61  ;;  %v436_v61 = vsub.f32 %v1007_v44, %v1415_v7  ;;  %v442_v7 = vsub.f32 %v1025_v57, %v1419_v1  ;;  %v185_v60 = vsub.f32 %v1022_v56, %v1421_v48 }
  0x1f   :  { %231 = vmatpush.msra.mxu2 %v982_v30  ;;  %274 = vmatpush.msra.mxu3 %v958_v0  ;;  %v1125_v48 = vsub.f32 %v37_v45, %v1092_v27  ;;  %v454_v36 = vsub.f32 %v1065_v59, %v1423_v38  ;;  %v460_v38 = vsub.f32 %v1085_v33, %v1424_v14  ;;  %v1433_v14 = vand.u32 4294901760, %v1103_v24 }
  0x20   :  { %80 = vmatpush.msra.mxu0 %v979_v26  ;;  %157 = vmatpush.msra.mxu1 %v156_v6  ;;  %v36_v6 = vld [vmem:[%s1403_s1 + $0xb8] sm:$0xff]  ;;  %v437_v1 = vand.u32 4294901760, %v436_v61  ;;  %v1430_v61 = vand.u32 4294901760, %v835_v15  ;;  %v443_v8 = vand.u32 4294901760, %v442_v7  ;;  %v1431_v7 = vand.u32 4294901760, %v839_v16 }
  0x21   :  { %234 = vmatpush.msra.mxu2 %v999_v42  ;;  %276 = vmatpush.msra.mxu3 %v979_v26  ;;  %v1150_v16 = vand.u32 4294901760, %v34_v63 }
  0x22   :  { %82 = vmatpush.msra.mxu0 %v986_v31  ;;  %163 = vmatpush.msra.mxu1 %v162_v49  ;;  %v35_v49 = vld [vmem:[%s1403_s1 + $0xb0] sm:$0xff] }
  0x23   :  { %237 = vmatpush.msra.mxu2 %v1015_v54  ;;  %278 = vmatpush.msra.mxu3 %v986_v31 }
  0x24   :  { %289 = vmatpush.msrb.mxu0 %v94_v22  ;;  %169 = vmatpush.msra.mxu1 %v168_v47  ;;  %v1119_v22 = vand.u32 4294901760, %v36_v6  ;;  %v186_v47 = vand.u32 4294901760, %v185_v60  ;;  %v449_v60 = vand.u32 4294901760, %v448_v18  ;;  %v455_v18 = vand.u32 4294901760, %v454_v36 }
  0x25   :  { %240 = vmatpush.msra.mxu2 %v1022_v56  ;;  %438 = vmatpush.msrb.mxu3 %v437_v1  ;;  %v1432_v1 = vand.u32 4294901760, %v847_v19  ;;  %v461_v36 = vand.u32 4294901760, %v460_v38  ;;  %v31_v38 = vld [vmem:[%s1403_s1 + $0x90] sm:$0xff] }
  0x26   :  { %293 = vmatpush.msrb.mxu0 %v1430_v61  ;;  %175 = vmatpush.msra.mxu1 %v174_v37  ;;  %v1135_v61 = vand.u32 4294901760, %v35_v49  ;;  %v33_v37 = vld [vmem:[%s1403_s1 + $0xa0] sm:$0xff]  ;;  %v1148_v15 = vsub.f32 %v36_v6, %v1119_v22  ;;  %v466_v6 = vsub.f32 %v1103_v24, %v1433_v14 }
  0x27   :  { %393 = vmatpush.msrb.mxu2 %v973_v12  ;;  %444 = vmatpush.msrb.mxu3 %v443_v8  ;;  %v1165_v19 = vand.u32 4294901760, %v33_v37  ;;  %v1434_v8 = vand.u32 4294901760, %v850_v20  ;;  %v1436_v20 = vand.u32 4294901760, %v853_v21 }
  0x28   :  { %297 = vmatpush.msrb.mxu0 %v1431_v7  ;;  %181 = vmatpush.msra.mxu1 %v180_v34  ;;  %v32_v34 = vld [vmem:[%s1403_s1 + $0x98] sm:$0xff]  ;;  %v1163_v45 = vsub.f32 %v35_v49, %v1135_v61  ;;  %v47_v7 = vld.sshfl [vmem:[#allocation1] sm:$0xff pattern:$0x73625140]  ;;  %v1427_v14 = vand.u32 4294901760, %v1148_v15  ;;  %v1176_v49 = vsub.f32 %v34_v63, %v1150_v16  ;;  %v467_v63 = vand.u32 4294901760, %v466_v6 }
  0x29   :  { %395 = vmatpush.msrb.mxu2 %v988_v32  ;;  %450 = vmatpush.msrb.mxu3 %v449_v60  ;;  %v1194_v21 = vand.u32 4294901760, %v47_v7  ;;  %v1207_v6 = vand.u32 4294901760, %v31_v38 }
  0x2a   :  { %301 = vmatpush.msrb.mxu0 %v1432_v1  ;;  %187 = vmatpush.msra.mxu1 %v186_v47  ;;  %v1435_v1 = vand.u32 4294901760, %v1109_v23  ;;  %v1428_v60 = vand.u32 4294901760, %v1163_v45 }
  0x2b   :  { %397 = vmatpush.msrb.mxu2 %v1017_v55  ;;  %v1178_v55 = vand.u32 4294901760, %v32_v34  ;;  %456 = vmatpush.msrb.mxu3 %v455_v18  ;;  %v495_v18 = vand.u32 4294901760, %v1176_v49 }
  0x2c   :  { %305 = vmatpush.msrb.mxu0 %v1434_v8  ;;  %356 = vmatpush.msrb.mxu1 %v803_v3  ;;  %v472_v47 = vsub.f32 %v1109_v23, %v1435_v1  ;;  %v1437_v3 = vand.u32 4294901760, %v1125_v48  ;;  %v1192_v1 = vsub.f32 %v33_v37, %v1165_v19  ;;  %v484_v37 = vsub.f32 %v1148_v15, %v1427_v14 }
  0x2d   :  { %399 = vmatpush.msrb.mxu2 %v1035_v13  ;;  %462 = vmatpush.msrb.mxu3 %v461_v36  ;;  %v490_v36 = vsub.f32 %v1163_v45, %v1428_v60  ;;  %v1221_v14 = vsub.f32 %v47_v7, %v1194_v21  ;;  %v496_v7 = vsub.f32 %v1176_v49, %v495_v18  ;;  %v1441_v60 = vand.u32 4294901760, %v926_v52 }
  0x2e   :  { %309 = vmatpush.msrb.mxu0 %v1436_v20  ;;  %358 = vmatpush.msrb.mxu1 %v805_v4  ;;  %v478_v8 = vsub.f32 %v1125_v48, %v1437_v3  ;;  %v1438_v4 = vand.u32 4294901760, %v870_v29  ;;  %v473_v20 = vand.u32 4294901760, %v472_v47  ;;  %v30_v3 = vld [vmem:[%s1403_s1 + $0x88] sm:$0xff]  ;;  %v1210_v29 = vsub.f32 %v32_v34, %v1178_v55 }
  0x2f   :  { %401 = vmatpush.msrb.mxu2 %v1051_v43  ;;  %468 = vmatpush.msrb.mxu3 %v467_v63  ;;  %v1223_v34 = vand.u32 4294901760, %v30_v3  ;;  %v1442_v52 = vand.u32 4294901760, %v931_v53 }
  0x30   :  { %313 = vmatpush.msrb.mxu0 %v1438_v4  ;;  %360 = vmatpush.msrb.mxu1 %v807_v5  ;;  %v1439_v5 = vand.u32 4294901760, %v897_v40  ;;  %v479_v47 = vand.u32 4294901760, %v478_v8  ;;  %v501_v4 = vand.u32 4294901760, %v1192_v1  ;;  %v29_v40 = vld [vmem:[%s1403_s1 + $0x80] sm:$0xff]  ;;  %v485_v8 = vand.u32 4294901760, %v484_v37  ;;  %s778_s1 = smov [#allocation2]  }
  0x31   :  { %403 = vmatpush.msrb.mxu2 %v1067_v51  ;;  %474 = vmatpush.msrb.mxu3 %v473_v20  ;;  %v507_v63 = vand.u32 4294901760, %v1210_v29  ;;  %v85_v37 = vand.u32 4294901760, %v1221_v14  ;;  %s740_s17 = sshll.u32 %s778_s1, 4  ;;  %s741_s17 = int_to_ptr.vmem [resolvable:$true] %s740_s17 }
  0x32   :  { %317 = vmatpush.msrb.mxu0 %v1439_v5  ;;  %362 = vmatpush.msrb.mxu1 %v818_v9  ;;  %v1440_v9 = vand.u32 4294901760, %v911_v46  ;;  %v1237_v5 = vsub.f32 %v31_v38, %v1207_v6  ;;  %v1242_v46 = vand.u32 4294901760, %v29_v40  ;;  %v502_v20 = vsub.f32 %v1192_v1, %v501_v4 }
  0x33   :  { %405 = vmatpush.msrb.mxu2 %v1077_v62  ;;  %480 = vmatpush.msrb.mxu3 %v479_v47  ;;  %v1250_v38 = vsub.f32 %v30_v3, %v1223_v34  ;;  %v508_v47 = vsub.f32 %v1210_v29, %v507_v63  ;;  %v86_v3 = vsub.f32 %v1221_v14, %v85_v37 }
  0x34   :  { %321 = vmatpush.msrb.mxu0 %v1440_v9  ;;  %364 = vmatpush.msrb.mxu1 %v820_v10  ;;  %v491_v10 = vand.u32 4294901760, %v490_v36  ;;  %v513_v36 = vand.u32 4294901760, %v1237_v5  ;;  %v1443_v9 = vand.u32 4294901760, %v962_v2  ;;  %v1264_v53 = vsub.f32 %v29_v40, %v1242_v46 }
  0x35   :  { %407 = vmatpush.msrb.mxu2 %v1092_v27  ;;  %486 = vmatpush.msrb.mxu3 %v485_v8  ;;  %v519_v8 = vand.u32 4294901760, %v1250_v38  ;;  %v1445_v40 = vand.u32 4294901760, %v999_v42  ;;  %v1447_v42 = vand.u32 4294901760, %v1022_v56 }
  0x36   :  { %325 = vmatpush.msrb.mxu0 %v1441_v60  ;;  %366 = vmatpush.msrb.mxu1 %v822_v11  ;;  %v48_v11 = vld.sshfl [vmem:[#allocation1 + $0x8] sm:$0xff pattern:$0x73625140]  ;;  %v497_v60 = vand.u32 4294901760, %v496_v7  ;;  %v514_v2 = vsub.f32 %v1237_v5, %v513_v36 }
  0x37   :  { %409 = vmatpush.msrb.mxu2 %v1119_v22  ;;  %492 = vmatpush.msrb.mxu3 %v491_v10  ;;  %v1269_v7 = vand.u32 4294901760, %v48_v11  ;;  %v525_v10 = vand.u32 4294901760, %v1264_v53 }
  0x38   :  { %329 = vmatpush.msrb.mxu0 %v1442_v52  ;;  %368 = vmatpush.msrb.mxu1 %v841_v17  ;;  %v503_v17 = vand.u32 4294901760, %v502_v20  ;;  %v1444_v52 = vand.u32 4294901760, %v982_v30  ;;  %v87_v30 = vand.u32 4294901760, %v86_v3 }
  0x39   :  { %411 = vmatpush.msrb.mxu2 %v1135_v61  ;;  %498 = vmatpush.msrb.mxu3 %v497_v60  ;;  %v1287_v20 = vsub.f32 %v48_v11, %v1269_v7  ;;  %v1446_v60 = vand.u32 4294901760, %v1015_v54 }
  0x3a   :  { %333 = vmatpush.msrb.mxu0 %v1443_v9  ;;  %370 = vmatpush.msrb.mxu1 %v860_v25  ;;  %v509_v25 = vand.u32 4294901760, %v508_v47  ;;  %v526_v47 = vsub.f32 %v1264_v53, %v525_v10 }
  0x3b   :  { %413 = vmatpush.msrb.mxu2 %v1150_v16  ;;  %504 = vmatpush.msrb.mxu3 %v503_v17  ;;  %v426_v11 = vand.u32 4294901760, %v1287_v20 }
  0x3c   :  { %337 = vmatpush.msrb.mxu0 %v1444_v52  ;;  %372 = vmatpush.msrb.mxu1 %v867_v28  ;;  %v520_v28 = vsub.f32 %v1250_v38, %v519_v8 }
  0x3d   :  { %415 = vmatpush.msrb.mxu2 %v1165_v19  ;;  %510 = vmatpush.msrb.mxu3 %v509_v25 }
  0x3e   :  { %341 = vmatpush.msrb.mxu0 %v1445_v40  ;;  %374 = vmatpush.msrb.mxu1 %v888_v35  ;;  %v515_v35 = vand.u32 4294901760, %v514_v2  ;;  %v521_v54 = vand.u32 4294901760, %v520_v28 }
  0x3f   :  { %417 = vmatpush.msrb.mxu2 %v1178_v55  ;;  %88 = vmatmul.f32.vlgmr.msra.gmra.mxu0 %v87_v30 }
  0x40   :  { %345 = vmatpush.msrb.mxu0 %v1446_v60  ;;  %376 = vmatpush.msrb.mxu1 %v900_v41  ;;  %v527_v41 = vand.u32 4294901760, %v526_v47 }
  0x41   :  { %419 = vmatpush.msrb.mxu2 %v1207_v6  ;;  %516 = vmatpush.msrb.mxu3 %v515_v35 }
  0x42   :  { %349 = vmatpush.msrb.mxu0 %v1447_v42  ;;  %378 = vmatpush.msrb.mxu1 %v922_v50  ;;  %v427_v50 = vsub.f32 %v1287_v20, %v426_v11 }
  0x43   :  { %421 = vmatpush.msrb.mxu2 %v1223_v34  ;;  %522 = vmatpush.msrb.mxu3 %v521_v54 }
  0x44   :  { %536 = vmatpush.msra.mxu0 %v1007_v44  ;;  %380 = vmatpush.msrb.mxu1 %v943_v58  ;;  %v1448_v58 = vand.u32 4294901760, %v1007_v44  ;;  %v428_v56 = vand.u32 4294901760, %v427_v50  ;;  %v1450_v44 = vand.u32 4294901760, %v1049_v39 }
  0x45   :  { %243 = vmatmul.f32.vlgmr.msra.gmra.mxu2 %v1221_v14  ;;  %282 = vmatmul.f32.vlgmr.msra.gmra.mxu3 %v85_v37 }
  0x46   :  { %539 = vmatpush.msra.mxu0 %v1025_v57  ;;  %382 = vmatpush.msrb.mxu1 %v958_v0  ;;  %v1449_v0 = vand.u32 4294901760, %v1025_v57  ;;  %v1452_v57 = vld [vmem:[#allocation5_spill] sm:$0xff] }
  0x47   :  { %423 = vmatpush.msrb.mxu2 %v1242_v46  ;;  %528 = vmatpush.msrb.mxu3 %v527_v41 }
  0x48   :  { %542 = vmatpush.msra.mxu0 %v1049_v39  ;;  %384 = vmatpush.msrb.mxu1 %v979_v26  ;;  %v1451_v26 = vand.u32 4294901760, %v1065_v59 }
  0x49   :  { %630 = vmatpush.msra.mxu2 %v1448_v58  ;;  %189 = vmatmul.f32.vlgmr.msra.gmra.mxu1 %v1194_v21 }
  0x4a   :  { %545 = vmatpush.msra.mxu0 %v1065_v59  ;;  %697 = vmatpush.msra.mxu3 %v973_v12  ;;  %v1454_v59 = vand.u32 4294901760, %v1103_v24 }
  0x4b   :  { %634 = vmatpush.msra.mxu2 %v1449_v0  ;;  %386 = vmatpush.msrb.mxu1 %v986_v31  ;;  %v1456_v31 = vand.u32 4294901760, %v1125_v48 }
  0x4c   :  { %548 = vmatpush.msra.mxu0 %v1085_v33  ;;  %699 = vmatpush.msra.mxu3 %v988_v32 }
  0x4d   :  { %589 = vmatpush.msra.mxu1 %v973_v12  ;;  %638 = vmatpush.msra.mxu2 %v1450_v44  ;;  %v1453_v12 = vand.u32 4294901760, %v1085_v33  ;;  %v1455_v33 = vand.u32 4294901760, %v1109_v23 }
  0x4e   :  { %429 = vmatmul.f32.vlgmr.msrb.gmra.mxu2 %v428_v56  ;;  %551 = vmatpush.msra.mxu0 %v1103_v24  ;;  %v1457_v24 = vand.u32 4294901760, %v1148_v15 }
  0x4f   :  { %591 = vmatpush.msra.mxu1 %v988_v32  ;;  %642 = vmatpush.msra.mxu2 %v1451_v26 }
  0x50   :  { %701 = vmatpush.msra.mxu3 %v1452_v57  ;;  %351 = vmatmul.f32.vlgmr.msrb.gmra.mxu0 %v1194_v21 }
  0x51   :  { %530 = vmatmul.f32.vlgmr.msrb.gmra.mxu3 %v1269_v7  ;;  %554 = vmatpush.msra.mxu0 %v1109_v23  ;;  %v1458_v23 = vand.u32 4294901760, %v1163_v45 }
  0x52   :  { %593 = vmatpush.msra.mxu1 %v1452_v57  ;;  %646 = vmatpush.msra.mxu2 %v1453_v12 }
  0x53   :  { %703 = vmatpush.msra.mxu3 %v1035_v13  ;;  %388 = vmatmul.f32.vlgmr.msrb.gmra.mxu1 %v1194_v21 }
  0x54   :  { %557 = vmatpush.msra.mxu0 %v1125_v48  ;;  %595 = vmatpush.msra.mxu1 %v1035_v13 }
  0x55   :  { %650 = vmatpush.msra.mxu2 %v1454_v59  ;;  %705 = vmatpush.msra.mxu3 %v1051_v43 }
  0x56   :  { %560 = vmatpush.msra.mxu0 %v1148_v15  ;;  %597 = vmatpush.msra.mxu1 %v1051_v43 }
  0x57   :  { %654 = vmatpush.msra.mxu2 %v1455_v33  ;;  %707 = vmatpush.msra.mxu3 %v1067_v51 }
  0x58   :  { %563 = vmatpush.msra.mxu0 %v1163_v45  ;;  %599 = vmatpush.msra.mxu1 %v1067_v51 }
  0x59   :  { %658 = vmatpush.msra.mxu2 %v1456_v31  ;;  %709 = vmatpush.msra.mxu3 %v1077_v62 }
  0x5a   :  { %566 = vmatpush.msra.mxu0 %v1176_v49  ;;  %601 = vmatpush.msra.mxu1 %v1077_v62 }
  0x5b   :  { %662 = vmatpush.msra.mxu2 %v1457_v24  ;;  %711 = vmatpush.msra.mxu3 %v1092_v27 }
  0x5c   :  { %569 = vmatpush.msra.mxu0 %v1192_v1  ;;  %603 = vmatpush.msra.mxu1 %v1092_v27 }
  0x5d   :  { %666 = vmatpush.msra.mxu2 %v1458_v23  ;;  %713 = vmatpush.msra.mxu3 %v1119_v22 }
  0x5e   :  { %572 = vmatpush.msra.mxu0 %v1210_v29  ;;  %605 = vmatpush.msra.mxu1 %v1119_v22 }
  0x5f   :  { %670 = vmatpush.msra.mxu2 %v495_v18  ;;  %715 = vmatpush.msra.mxu3 %v1135_v61 }
  0x60   :  { %575 = vmatpush.msra.mxu0 %v1237_v5  ;;  %607 = vmatpush.msra.mxu1 %v1135_v61 }
  0x61   :  { %674 = vmatpush.msra.mxu2 %v501_v4  ;;  %717 = vmatpush.msra.mxu3 %v1150_v16 }
  0x62   :  { %578 = vmatpush.msra.mxu0 %v1250_v38  ;;  %609 = vmatpush.msra.mxu1 %v1150_v16 }
  0x63   :  { %678 = vmatpush.msra.mxu2 %v507_v63  ;;  %719 = vmatpush.msra.mxu3 %v1165_v19 }
  0x64   :  { %581 = vmatpush.msra.mxu0 %v1264_v53  ;;  %611 = vmatpush.msra.mxu1 %v1165_v19 }
  0x65   :  { %682 = vmatpush.msra.mxu2 %v513_v36  ;;  %721 = vmatpush.msra.mxu3 %v1178_v55 }
  0x66   :  { %584 = vmatmul.f32.vlgmr.msra.gmra.mxu0 %v1287_v20  ;;  %613 = vmatpush.msra.mxu1 %v1178_v55 }
  0x67   :  { %686 = vmatpush.msra.mxu2 %v519_v8  ;;  %723 = vmatpush.msra.mxu3 %v1207_v6 }
  0x68   :  { %615 = vmatpush.msra.mxu1 %v1207_v6 }
  0x69   :  { %690 = vmatpush.msra.mxu2 %v525_v10  ;;  %725 = vmatpush.msra.mxu3 %v1223_v34 }
  0x6a   :  { %692 = vmatmul.f32.vlgmr.msra.gmra.mxu2 %v1269_v7  ;;  %617 = vmatpush.msra.mxu1 %v1223_v34 }
  0x6b   :  { %727 = vmatpush.msra.mxu3 %v1242_v46 }
  0x6c   :  { %729 = vmatmul.f32.vlgmr.msra.gmra.mxu3 %v1269_v7  ;;  %619 = vmatpush.msra.mxu1 %v1242_v46 }
  0x6d   :  { %623 = vmatmul.f32.vlgmr.msra.gmra.mxu1 %v426_v11 }
  0xbc   :  { %v89_v51 = vpop.f32.mrf.mxu0 }
  0xc6   :  { %v190_v27 = vpop.f32.mrf.mxu1 }
  0xc7   :  { %v191_v32 = vadd.f32 %v190_v27, %v89_v51 }
  0xc8   :  { %v244_v39 = vpop.f32.mrf.mxu2  ;;  %v283_v13 = vpop.f32.mrf.mxu3 }
  0xc9   :  { %v245_v55 = vadd.f32 %v244_v39, %v191_v32 }
  0xcb   :  { %v284_v43 = vadd.f32 %v283_v13, %v245_v55 }
  0xcd   :  { %v352_v48 = vpop.f32.mrf.mxu0 }
  0xce   :  { %v353_v62 = vadd.f32 %v352_v48, %v284_v43 }
  0xd0   :  { %v389_v22 = vpop.f32.mrf.mxu1 }
  0xd1   :  { %v390_v15 = vadd.f32 %v389_v22, %v353_v62  ;;  %v430_v61 = vpop.f32.mrf.mxu2 }
  0xd3   :  { %v431_v45 = vadd.f32 %v430_v61, %v390_v15 }
  0xd4   :  { %v531_v16 = vpop.f32.mrf.mxu3 }
  0xd5   :  { %v532_v14 = vadd.f32 %v531_v16, %v431_v45 }
  0xe3   :  { %v585_v19 = vpop.f32.mrf.mxu0 }
  0xe4   :  { %v586_v49 = vadd.f32 %v585_v19, %v532_v14 }
  0xea   :  { %v624_v1 = vpop.f32.mrf.mxu1 }
  0xeb   :  { %v625_v21 = vadd.f32 %v624_v1, %v586_v49 }
  0xed   :  { %v693_v18 = vpop.f32.mrf.mxu2 }
  0xee   :  { %v694_v6 = vadd.f32 %v693_v18, %v625_v21 }
  0xef   :  { %v730_v29 = vpop.f32.mrf.mxu3 }
  0xf0   :  { %v731_v4 = vadd.f32 %v730_v29, %v694_v6 }
  0xf2   :  { %734 = vst.msk [vmem:[#allocation2] sm:$0x3] %vm733_vm0, %v731_v4 }
  0xf3   :  { %745 = dma.vmem_to_hbm [thread:$0]  %s741_s17, 32, %s743_s20, [#allocation3]  }
  0xf4   :  { %776 = dma.done.wait [#allocation3], 32  }
  0xf5   :  { %777 = vsyncadd [#allocation3], 4294967264 }
  0xf6   :  { %750 = vsyncpa [#allocation3], 1 }

</bundles_post_ra>
